<compile_context>
chip_gen: v7x
topology: tpu7x:2x2x1
jax: 0.10.0
libtpu: 0.0.40
codegen_flags: <defaults>
</compile_context>

<pallas_src>
import jax
import jax.numpy as jnp
from jax.experimental import pallas as pl
from jax.experimental.pallas import tpu as pltpu

_LANE = 2048                       # lane width of the flattened bucket slab
_TARGET_BLOCK_BYTES = 4 << 20      # 4 MiB per VMEM buffer -> 24 MiB total (2x buffered, 3 streams)
_MIN_PALLAS_ELEMS = 8 * _LANE      # need at least one (8, 2048) sublane block to be worth a launch


def _make_fwd_kernel(rank, dtype):
    """Kernel body; rank folded in as a weakly-typed trace-time immediate."""
    # Weak Python scalar: no dtype promotion for float OR integer buckets.
    rank_const = float(rank) if jnp.issubdtype(dtype, jnp.floating) else int(rank)

    def kernel(x_ref, p_ref, o_ref):
        # Single fused elementwise chain on the VPU; HBM-bound, VALU has slack.
        o_ref[...] = x_ref[...] + p_ref[...] + rank_const

    return kernel


def _block_rows(dtype):
    """Rows per block so each VMEM buffer is ~4 MiB regardless of dtype."""
    itemsize = jnp.dtype(dtype).itemsize
    bm = _TARGET_BLOCK_BYTES // (itemsize * _LANE)
    return max(8, (bm // 8) * 8)


def _grid_semantics():
    """CORE_PARALLEL on v7x (2 TCs/chip); plain PARALLEL elsewhere (1 TC)."""
    try:
        kind = jax.devices()[0].device_kind.lower()
    except Exception:  # pragma: no cover - defensive
        kind = ""
    if ("v7" in kind or "tpu7" in kind) and hasattr(pltpu, "CORE_PARALLEL"):
        return (pltpu.CORE_PARALLEL,)
    return (pltpu.PARALLEL,)


def _fwd_tiled_pallas(x2d, p2d, rank):
    """Lane-dense tiled kernel over a (rows, _LANE) slab; out aliases x (in-place)."""
    m, n = x2d.shape
    bm = _block_rows(x2d.dtype)
    grid = (pl.cdiv(m, bm),)  # partial last row-block handled by masked stores
    return pl.pallas_call(
        _make_fwd_kernel(rank, x2d.dtype),
        out_shape=jax.ShapeDtypeStruct((m, n), x2d.dtype),
        grid_spec=pltpu.PrefetchScalarGridSpec(
            num_scalar_prefetch=0,
            grid=grid,
            in_specs=[
                pl.BlockSpec((bm, n), lambda i: (i, 0)),  # x  (full lane width)
                pl.BlockSpec((bm, n), lambda i: (i, 0)),  # p
            ],
            out_specs=pl.BlockSpec((bm, n), lambda i: (i, 0)),
        ),
        # In-place DDP bucket update: output buffer aliases the bucket input.
        input_output_aliases={0: 0},
        compiler_params=pltpu.CompilerParams(
            dimension_semantics=_grid_semantics(),
        ),
    )(x2d, p2d)


def _fwd_bucket_pallas(x, p, rank):
    """Flatten any same-shaped bucket to a lane-dense 2-D slab and stream it."""
    orig_shape = x.shape
    xf = x.reshape(-1)
    pf = p.reshape(-1)
    total = xf.size
    rem = total % _LANE
    main = total - rem
    rows = main // _LANE

    out_main = _fwd_tiled_pallas(
        xf[:main].reshape(rows, _LANE),
        pf[:main].reshape(rows, _LANE),
        rank,
    ).reshape(-1)

    if rem:
        # < 2048-element tail: layout plumbing, let XLA fuse it.
        rank_c = jnp.asarray(rank, dtype=x.dtype)
        out_tail = pf[main:] + (xf[main:] + rank_c)
        out_main = jnp.concatenate([out_main, out_tail])
    return out_main.reshape(orig_shape)


def _fwd_small_pallas(x, p, rank):
    """Full-array single-block kernel for the tiny (2, 2) module case."""
    return pl.pallas_call(
        _make_fwd_kernel(rank, x.dtype),
        out_shape=jax.ShapeDtypeStruct(x.shape, x.dtype),
        in_specs=[
            pl.BlockSpec(x.shape, lambda: (0, 0)),
            pl.BlockSpec(p.shape, lambda: (0, 0)),
        ],
        out_specs=pl.BlockSpec(x.shape, lambda: (0, 0)),
    )(x, p)


def module_for_ddp_comm_hook_forward(x, p, rank, *, force_pallas=False):
    """Pallas/JAX implementation of ModuleForDdpCommHook.forward(x, rank).

    out = p + (x + rank).  rank is a fixed per-process constant (baked in at
    trace time; a traced/varying rank would retrace per value).
      * big same-shaped buckets -> flattened lane-dense tiled Pallas kernel
        (in-place via input_output_aliases),
      * tiny / broadcast-shaped inputs -> fused XLA elementwise (fastest),
      * force_pallas=True -> single-block Pallas kernel at tiny sizes.
    """
    x = jnp.asarray(x)
    p = jnp.asarray(p)

    same_shape = p.shape == x.shape
    if same_shape and x.size - (x.size % _LANE) >= _MIN_PALLAS_ELEMS:
        return _fwd_bucket_pallas(x, p, rank)
    if force_pallas and same_shape and x.ndim == 2:
        return _fwd_small_pallas(x, p, rank)
    # Tiny / broadcast case: fused XLA op beats any pallas_call at 4 elements.
    return p + (x + jnp.asarray(rank, dtype=x.dtype))


if __name__ == "__main__":
    key = jax.random.PRNGKey(0)
    k_small, k_b1, k_b2 = jax.random.split(key, 3)

    rank = 1  # e.g. DDP rank 1 (fixed per process)

    # --- the actual module case: p = ones(2, 2), x of shape (2, 2) ----------
    p = jnp.ones((2, 2), dtype=jnp.float32)
    x = jax.random.normal(k_small, (2, 2), dtype=jnp.float32)
    ref_small = p + (x + jnp.float32(rank))

    out_xla = jax.block_until_ready(module_for_ddp_comm_hook_forward(x, p, rank))
    assert out_xla.shape == (2, 2)
    assert jnp.allclose(out_xla, ref_small, atol=1e-6), (out_xla, ref_small)

    out_pallas = jax.block_until_ready(
        module_for_ddp_comm_hook_forward(x, p, rank, force_pallas=True)
    )
    assert jnp.allclose(out_pallas, ref_small, atol=1e-6), (out_pallas, ref_small)

    # --- bucket-scale path A: 2-D bucket, >1 grid step + partial last block --
    m, n = 520, 2048  # 520 rows -> grid (2,) with a masked partial second block
    xb = jax.random.normal(k_b1, (m, n), dtype=jnp.float32)
    pb = jnp.ones((m, n), dtype=jnp.float32)
    out_b = jax.block_until_ready(module_for_ddp_comm_hook_forward(xb, pb, rank))
    ref_b = pb + (xb + jnp.float32(rank))
    assert out_b.shape == (m, n)
    assert jnp.allclose(out_b, ref_b, atol=1e-6)

    # --- bucket-scale path B: odd 3-D bucket -> flatten + XLA lane remainder --
    xc = jax.random.normal(k_b2, (3, 7, 1000), dtype=jnp.float32)
    pc = jnp.ones((3, 7, 1000), dtype=jnp.float32)
    out_c = jax.block_until_ready(module_for_ddp_comm_hook_forward(xc, pc, rank))
    ref_c = pc + (xc + jnp.float32(rank))
    assert out_c.shape == (3, 7, 1000)
    assert jnp.allclose(out_c, ref_c, atol=1e-6)

    print("KERNEL_OK")
</pallas_src>

<mosaic_0001>
module attributes {stable_mosaic.version = 11 : i64} {
  func.func @kernel(%arg0: memref<2x2xf32, #tpu.memory_space<vmem>>, %arg1: memref<2x2xf32, #tpu.memory_space<vmem>>, %arg2: memref<2x2xf32, #tpu.memory_space<vmem>>) attributes {dimension_semantics = [], scalar_prefetch = 0 : i64, scratch_operands = 0 : i64, tpu.core_type = #tpu.core_type<tc>} {
    %c0 = arith.constant 0 : index
    %c0_0 = arith.constant 0 : index
    %0 = vector.load %arg0[%c0, %c0_0] : memref<2x2xf32, #tpu.memory_space<vmem>>, vector<2x2xf32>
    %c0_1 = arith.constant 0 : index
    %c0_2 = arith.constant 0 : index
    %1 = vector.load %arg1[%c0_1, %c0_2] : memref<2x2xf32, #tpu.memory_space<vmem>>, vector<2x2xf32>
    %2 = arith.addf %0, %1 : vector<2x2xf32>
    %cst = arith.constant 1.000000e+00 : f32
    %3 = vector.broadcast %cst : f32 to vector<2x2xf32>
    %4 = arith.addf %2, %3 : vector<2x2xf32>
    %c0_3 = arith.constant 0 : index
    %c0_4 = arith.constant 0 : index
    %5 = vector.load %arg2[%c0_3, %c0_4] : memref<2x2xf32, #tpu.memory_space<vmem>>, vector<2x2xf32>
    tpu.vector_store %arg2[%c0_3, %c0_4], %4 {strides = array<i32>} : memref<2x2xf32, #tpu.memory_space<vmem>>, vector<2x2xf32>,
    return
  }
}

</mosaic_0001>

<bundles_post_ra>
// kernel: tpu_custom_call.1
= control target key start
LH: loop header
LB: loop body
LE: loop exit
PB: predicated region body
PF: predicated region fallthrough
CT: control target
= control target key end

     0   :  { %7 = vsyncpa [#allocation3], 0  ;;  %s139_s0 = inlined_call_operand.hbm [shape: f32[2,2], index: 0, kind: input, shape index: {}]   ;;  %s140_s1 = inlined_call_operand.vmem [shape: f32[2,2], index: 1, kind: input, shape index: {}]   ;;  %s141_s2 = inlined_call_operand.hbm [shape: f32[2,2], index: 2, kind: output, shape index: {}]  }
   0x1   :  { %8 = vsyncpa [#allocation4], 0  ;;  %s95_s9 = smov [#allocation2]   ;;  %s47_s13 = scalar_lea.hbm %s139_s0, 32 }
   0x2   :  { %s15_s10 = sshll.u32 %s95_s9, 4  ;;  %p48_p0 = scmp.ne.s32.totalorder %s139_s0, %s47_s13  ;;  %s16_s10 = int_to_ptr.vmem [resolvable:$true] %s15_s10 }
   0x3   :  { %p51_p1 = scmp.lt.u32.totalorder %s47_s13, %s139_s0 }
   0x5   :  { %p53_p2 = pnand %p51_p1, %p48_p0 }
   0x7   :  { %56 = shalt.err (!%p53_p2)
}
   0x8   :  { %s57_s18 = scalar_lea.vmem %s16_s10, 32  ;;  %p62_p4 = scmp.lt.s32.totalorder %s16_s10, %s16_s10 }
   0x9   :  { %p58_p3 = scmp.ne.s32.totalorder %s16_s10, %s57_s18  ;;  %p63_p5 = scmp.lt.s32.totalorder %s57_s18, %s57_s18 }
   0xb   :  { %p64_p6 = por %p63_p5, %p62_p4 }
   0xd   :  { %p65_p7 = pnand %p64_p6, %p58_p3 }
   0xf   :  { %68 = shalt.err (!%p65_p7)
}
  0x10   :  { %18 = dma.hbm_to_vmem [thread:$0]  %s139_s0, 32, %s16_s10, [#allocation3]  }
  0x11   :  { %91 = dma.done.wait [#allocation3], 32  }
  0x12   :  { %92 = vsyncadd [#allocation3], 4294967264  ;;  %v24_v0 = vld [vmem:[#allocation2] sm:$0x3]  ;;  %s96_s23 = smov [#allocation5]   ;;  %vm28_vm0 = vcmask 9216  }
  0x13   :  { %v25_v1 = vld [vmem:[%s140_s1] sm:$0x3]  ;;  %s36_s24 = sshll.u32 %s96_s23, 4  ;;  %s37_s24 = int_to_ptr.vmem [resolvable:$true] %s36_s24 }
  0x14   :  { %v26_v2 = vadd.f32 %v25_v1, %v24_v0  ;;  %s69_s25 = scalar_lea.vmem %s37_s24, 32  ;;  %p74_p9 = scmp.lt.s32.totalorder %s37_s24, %s37_s24 }
  0x15   :  { %p70_p8 = scmp.ne.s32.totalorder %s37_s24, %s69_s25  ;;  %p75_p10 = scmp.lt.s32.totalorder %s69_s25, %s69_s25 }
  0x16   :  { %v27_v3 = vadd.f32 1.0, %v26_v2 }
  0x17   :  { %p76_p11 = por %p75_p10, %p74_p9 }
  0x18   :  { %29 = vst.msk [vmem:[#allocation5] sm:$0x3] %vm28_vm0, %v27_v3 }
  0x19   :  { %p77_p12 = pnand %p76_p11, %p70_p8 }
  0x1b   :  { %80 = shalt.err (!%p77_p12)
}
  0x1c   :  { %s81_s27 = scalar_lea.hbm %s141_s2, 32 }
  0x1d   :  { %p82_p13 = scmp.ne.s32.totalorder %s141_s2, %s81_s27  ;;  %p85_p0 = scmp.lt.u32.totalorder %s81_s27, %s141_s2 }
  0x1f   :  { %p87_p1 = pnand %p85_p0, %p82_p13 }
  0x21   :  { %90 = shalt.err (!%p87_p1)
}
  0x22   :  { %39 = dma.vmem_to_hbm [thread:$0]  %s37_s24, 32, %s141_s2, [#allocation4]  }
  0x23   :  { %93 = dma.done.wait [#allocation4], 32  }
  0x24   :  { %94 = vsyncadd [#allocation4], 4294967264 }
  0x25   :  { %43 = vsyncpa [#allocation3], 1 }
  0x26   :  { %44 = vsyncpa [#allocation4], 1 }

</bundles_post_ra>
